<compile_context>
chip_gen: v7x
topology: tpu7x:2x2x1
jax: 0.10.0
libtpu: 0.0.40
codegen_flags: <defaults>
</compile_context>

<pallas_src>
import jax
import jax.numpy as jnp
from jax.experimental import pallas as pl
from jax.experimental.pallas import tpu as pltpu

_H1, _H2 = 64, 32  # hidden widths of the autoencoder


def _round_up(x, m):
    return ((x + m - 1) // m) * m


# ---------------------------------------------------------------------------
# Kernel: fully fused forward pass for one batch tile.
# ---------------------------------------------------------------------------
def _ae_kernel(x_ref, w1_ref, b1_ref, w2_ref, b2_ref,
               w3_ref, b3_ref, w4_ref, b4_ref, o_ref):

    def linear(h, w_ref, b_ref):
        # Feed the MXU operands in the weights' native dtype (no redundant f32 cast of the
        # weights); accumulate in f32 via preferred_element_type.  Bias add promotes to f32.
        y = jnp.dot(h.astype(w_ref.dtype), w_ref[...],
                    preferred_element_type=jnp.float32)
        return y + b_ref[...]

    h = jnp.maximum(linear(x_ref[...], w1_ref, b1_ref), 0.0)   # encoder L1 + ReLU
    h = jnp.maximum(linear(h, w2_ref, b2_ref), 0.0)            # encoder L2 + ReLU
    h = jnp.maximum(linear(h, w3_ref, b3_ref), 0.0)            # decoder L1 + ReLU
    z = linear(h, w4_ref, b4_ref)                              # decoder L2

    # sigmoid(z) = 1 / (1 + exp(-z)); exp + approx reciprocal both run on the EUP slot.
    o_ref[...] = (pl.reciprocal(1.0 + jnp.exp(-z), approx=True)).astype(o_ref.dtype)


# ---------------------------------------------------------------------------
# Tiling / VMEM sizing helpers (generation aware).
# ---------------------------------------------------------------------------
def _weight_bytes(D, itemsize):
    return (2 * D * _H1 + 2 * _H1 * _H2 + 2 * _H1 + _H2 + D) * itemsize


def _vmem_capacity_bytes():
    try:
        return int(pltpu.get_tpu_info().vmem_capacity_bytes)
    except Exception:
        return 64 << 20          # conservative fallback (v7x per-TC)


def _pick_batch_tile(B, D, x_itemsize, w_itemsize, budget_bytes):
    """Bytes-driven tile choice: whole batch if it fits, else fat tiles dividing the batch."""
    row_stream = 2 * 2 * D * x_itemsize          # x + out, double-buffered, per row
    act_per_row = 3 * _H1 * 4                    # intermediate f32 activations, per row
    avail = max(budget_bytes - int(1.5 * _weight_bytes(D, w_itemsize)) - (4 << 20),
                1 << 20)
    max_rows = max(8, avail // int(1.5 * (row_stream + act_per_row)))
    # Target fat tiles (~4 MiB of x per tile), capped by the VMEM-derived max.
    target = max(8, min(max_rows, (4 << 20) // max(D * x_itemsize, 1)))
    if B <= target:
        return B                                  # single grid step, block == full array
    B8 = _round_up(B, 8)
    tile = min(_round_up(target, 8), B8)
    tile = max(8, (tile // 8) * 8)
    while B8 % tile != 0:                         # prefer a tile that divides the (padded) batch
        tile -= 8
    return tile


def _vmem_limit_bytes(batch_tile, D, x_itemsize, w_itemsize, weight_bufs, capacity):
    streams = 2 * 2 * batch_tile * D * x_itemsize                 # x + out, double-buffered
    weights = weight_bufs * _weight_bytes(D, w_itemsize)
    acts = 3 * batch_tile * _H1 * 4
    need = int(1.5 * (streams + weights + acts)) + (4 << 20)
    return int(min(max(need, 32 << 20), int(0.85 * capacity)))


# ---------------------------------------------------------------------------
# Wrapper.
# ---------------------------------------------------------------------------
def autoencoder_forward(x, params, *, batch_tile=None, vmem_limit_bytes=None):
    """x: [B, input_dim]. params: dict w1..w4 ([in, out]) / b1..b4 ([1, out])."""
    B, D = x.shape
    w1, b1 = params["w1"], params["b1"]
    w2, b2 = params["w2"], params["b2"]
    w3, b3 = params["w3"], params["b3"]
    w4, b4 = params["w4"], params["b4"]
    assert w1.shape == (D, _H1) and w4.shape == (_H1, D)

    capacity = _vmem_capacity_bytes()
    budget = int(0.80 * capacity)

    if batch_tile is None:
        batch_tile = _pick_batch_tile(B, D, x.dtype.itemsize, w1.dtype.itemsize, budget)
    assert batch_tile == B or batch_tile % 8 == 0, \
        "batch_tile must equal B or be a multiple of 8 (f32 sublane tiling)"

    # Pad only as a last resort (padding + output slice add extra HBM passes).
    if batch_tile >= B:
        batch_tile = B
        B_pad = B
        x_in = x
    else:
        B_pad = _round_up(B, batch_tile)
        x_in = jnp.pad(x, ((0, B_pad - B), (0, 0))) if B_pad != B else x
    n_steps = B_pad // batch_tile

    # Single-buffer the grid-invariant weights only when their footprint is non-trivial
    # (matters on v7x's 64 MiB VMEM for large input_dim); tiny weights keep the default.
    single_buffer_weights = _weight_bytes(D, w1.dtype.itemsize) > (1 << 20)
    weight_bufs = 1 if single_buffer_weights else 2

    if vmem_limit_bytes is None:
        vmem_limit_bytes = _vmem_limit_bytes(batch_tile, D, x.dtype.itemsize,
                                             w1.dtype.itemsize, weight_bufs, capacity)

    def full_spec(arr):
        nd = arr.ndim
        if single_buffer_weights:
            return pl.BlockSpec(arr.shape, lambda i, nd=nd: (0,) * nd,
                                pipeline_mode=pl.Buffered(1))
        # Whole-array block, grid-invariant -> DMA'd once, resident in VMEM.
        return pl.BlockSpec(arr.shape, lambda i, nd=nd: (0,) * nd)

    out = pl.pallas_call(
        _ae_kernel,
        out_shape=jax.ShapeDtypeStruct((B_pad, D), x.dtype),
        grid_spec=pltpu.PrefetchScalarGridSpec(
            num_scalar_prefetch=0,
            grid=(n_steps,),
            in_specs=[
                pl.BlockSpec((batch_tile, D), lambda i: (i, 0)),   # x tile
                full_spec(w1), full_spec(b1),
                full_spec(w2), full_spec(b2),
                full_spec(w3), full_spec(b3),
                full_spec(w4), full_spec(b4),
            ],
            out_specs=pl.BlockSpec((batch_tile, D), lambda i: (i, 0)),
        ),
        compiler_params=pltpu.CompilerParams(
            dimension_semantics=("parallel",),     # batch axis is embarrassingly parallel
            vmem_limit_bytes=vmem_limit_bytes,
        ),
    )(x_in, w1, b1, w2, b2, w3, b3, w4, b4)

    return out if B_pad == B else out[:B]


# ---------------------------------------------------------------------------
# Params + reference.
# ---------------------------------------------------------------------------
def init_params(key, input_dim, param_dtype=jnp.float32):
    """PyTorch nn.Linear-style init U(-1/sqrt(fan_in), +1/sqrt(fan_in)).

    param_dtype=jnp.bfloat16 enables the native bf16xbf16->f32 MXU path and halves weight
    DMA / VMEM footprint for large input_dim (re-validate tolerances if you use it).
    """
    dims = [(input_dim, _H1), (_H1, _H2), (_H2, _H1), (_H1, input_dim)]
    params = {}
    for idx, (fan_in, fan_out) in enumerate(dims, start=1):
        key, kw, kb = jax.random.split(key, 3)
        bound = 1.0 / jnp.sqrt(fan_in)
        params[f"w{idx}"] = jax.random.uniform(
            kw, (fan_in, fan_out), jnp.float32, -bound, bound).astype(param_dtype)
        params[f"b{idx}"] = jax.random.uniform(
            kb, (1, fan_out), jnp.float32, -bound, bound).astype(param_dtype)
    return params


def _reference_forward(x, p):
    f32 = lambda a: a.astype(jnp.float32)
    h = jnp.maximum(x @ f32(p["w1"]) + f32(p["b1"]), 0.0)
    h = jnp.maximum(h @ f32(p["w2"]) + f32(p["b2"]), 0.0)
    h = jnp.maximum(h @ f32(p["w3"]) + f32(p["b3"]), 0.0)
    return jax.nn.sigmoid(h @ f32(p["w4"]) + f32(p["b4"]))


if __name__ == "__main__":
    key = jax.random.PRNGKey(0)
    key, kx = jax.random.split(key)

    batch, input_dim = 256, 16
    x = jax.random.normal(kx, (batch, input_dim), jnp.float32)
    params = init_params(key, input_dim)

    out = jax.block_until_ready(autoencoder_forward(x, params))

    ref = _reference_forward(x, params)
    assert out.shape == (batch, input_dim)
    # approx EUP reciprocal in the sigmoid -> slightly loose absolute tolerance
    assert jnp.allclose(out, ref, atol=5e-3, rtol=0.0), float(jnp.max(jnp.abs(out - ref)))

    print("KERNEL_OK")
</pallas_src>

<mosaic_0001>
module attributes {stable_mosaic.version = 11 : i64} {
  func.func @_ae_kernel(%arg0: i32, %arg1: memref<256x16xf32, #tpu.memory_space<vmem>>, %arg2: memref<16x64xf32, #tpu.memory_space<vmem>>, %arg3: memref<1x64xf32, #tpu.memory_space<vmem>>, %arg4: memref<64x32xf32, #tpu.memory_space<vmem>>, %arg5: memref<1x32xf32, #tpu.memory_space<vmem>>, %arg6: memref<32x64xf32, #tpu.memory_space<vmem>>, %arg7: memref<1x64xf32, #tpu.memory_space<vmem>>, %arg8: memref<64x16xf32, #tpu.memory_space<vmem>>, %arg9: memref<1x16xf32, #tpu.memory_space<vmem>>, %arg10: memref<256x16xf32, #tpu.memory_space<vmem>>) attributes {dimension_semantics = [#tpu.dimension_semantics<parallel>], iteration_bounds = array<i64: 1>, scalar_prefetch = 0 : i64, scratch_operands = 0 : i64, tpu.core_type = #tpu.core_type<tc>, window_params = [{transform_indices = @transform_0, window_bounds = array<i64: 256, 16>}, {pipeline_mode = #tpu.pipeline_mode<synchronous>, transform_indices = @transform_1, window_bounds = array<i64: 16, 64>}, {pipeline_mode = #tpu.pipeline_mode<synchronous>, transform_indices = @transform_2, window_bounds = array<i64: 1, 64>}, {pipeline_mode = #tpu.pipeline_mode<synchronous>, transform_indices = @transform_3, window_bounds = array<i64: 64, 32>}, {pipeline_mode = #tpu.pipeline_mode<synchronous>, transform_indices = @transform_4, window_bounds = array<i64: 1, 32>}, {pipeline_mode = #tpu.pipeline_mode<synchronous>, transform_indices = @transform_5, window_bounds = array<i64: 32, 64>}, {pipeline_mode = #tpu.pipeline_mode<synchronous>, transform_indices = @transform_6, window_bounds = array<i64: 1, 64>}, {pipeline_mode = #tpu.pipeline_mode<synchronous>, transform_indices = @transform_7, window_bounds = array<i64: 64, 16>}, {pipeline_mode = #tpu.pipeline_mode<synchronous>, transform_indices = @transform_8, window_bounds = array<i64: 1, 16>}, {transform_indices = @transform_9, window_bounds = array<i64: 256, 16>}]} {
    %c0 = arith.constant 0 : index
    %c0_0 = arith.constant 0 : index
    %0 = vector.load %arg1[%c0, %c0_0] : memref<256x16xf32, #tpu.memory_space<vmem>>, vector<256x16xf32>
    %c0_1 = arith.constant 0 : index
    %c0_2 = arith.constant 0 : index
    %1 = vector.load %arg2[%c0_1, %c0_2] : memref<16x64xf32, #tpu.memory_space<vmem>>, vector<16x64xf32>
    %cst = arith.constant dense<0.000000e+00> : vector<256x64xf32>
    %2 = tpu.matmul %0, %1, %cst {dimension_numbers = #tpu.dot_dimension_numbers<[1], [0], [0], [1], [0, 0, 1, 1], [], []>} : vector<256x16xf32>, vector<16x64xf32>, vector<256x64xf32> -> vector<256x64xf32>
    %c0_3 = arith.constant 0 : index
    %c0_4 = arith.constant 0 : index
    %3 = vector.load %arg3[%c0_3, %c0_4] : memref<1x64xf32, #tpu.memory_space<vmem>>, vector<1x64xf32>
    %4 = vector.broadcast %3 : vector<1x64xf32> to vector<256x64xf32>
    %5 = arith.addf %2, %4 : vector<256x64xf32>
    %cst_5 = arith.constant 0.000000e+00 : f32
    %6 = vector.broadcast %cst_5 : f32 to vector<256x64xf32>
    %7 = arith.maximumf %5, %6 : vector<256x64xf32>
    %c0_6 = arith.constant 0 : index
    %c0_7 = arith.constant 0 : index
    %8 = vector.load %arg4[%c0_6, %c0_7] : memref<64x32xf32, #tpu.memory_space<vmem>>, vector<64x32xf32>
    %cst_8 = arith.constant dense<0.000000e+00> : vector<256x32xf32>
    %9 = tpu.matmul %7, %8, %cst_8 {dimension_numbers = #tpu.dot_dimension_numbers<[1], [0], [0], [1], [0, 0, 1, 1], [], []>} : vector<256x64xf32>, vector<64x32xf32>, vector<256x32xf32> -> vector<256x32xf32>
    %c0_9 = arith.constant 0 : index
    %c0_10 = arith.constant 0 : index
    %10 = vector.load %arg5[%c0_9, %c0_10] : memref<1x32xf32, #tpu.memory_space<vmem>>, vector<1x32xf32>
    %11 = vector.broadcast %10 : vector<1x32xf32> to vector<256x32xf32>
    %12 = arith.addf %9, %11 : vector<256x32xf32>
    %cst_11 = arith.constant 0.000000e+00 : f32
    %13 = vector.broadcast %cst_11 : f32 to vector<256x32xf32>
    %14 = arith.maximumf %12, %13 : vector<256x32xf32>
    %c0_12 = arith.constant 0 : index
    %c0_13 = arith.constant 0 : index
    %15 = vector.load %arg6[%c0_12, %c0_13] : memref<32x64xf32, #tpu.memory_space<vmem>>, vector<32x64xf32>
    %cst_14 = arith.constant dense<0.000000e+00> : vector<256x64xf32>
    %16 = tpu.matmul %14, %15, %cst_14 {dimension_numbers = #tpu.dot_dimension_numbers<[1], [0], [0], [1], [0, 0, 1, 1], [], []>} : vector<256x32xf32>, vector<32x64xf32>, vector<256x64xf32> -> vector<256x64xf32>
    %c0_15 = arith.constant 0 : index
    %c0_16 = arith.constant 0 : index
    %17 = vector.load %arg7[%c0_15, %c0_16] : memref<1x64xf32, #tpu.memory_space<vmem>>, vector<1x64xf32>
    %18 = vector.broadcast %17 : vector<1x64xf32> to vector<256x64xf32>
    %19 = arith.addf %16, %18 : vector<256x64xf32>
    %cst_17 = arith.constant 0.000000e+00 : f32
    %20 = vector.broadcast %cst_17 : f32 to vector<256x64xf32>
    %21 = arith.maximumf %19, %20 : vector<256x64xf32>
    %c0_18 = arith.constant 0 : index
    %c0_19 = arith.constant 0 : index
    %22 = vector.load %arg8[%c0_18, %c0_19] : memref<64x16xf32, #tpu.memory_space<vmem>>, vector<64x16xf32>
    %cst_20 = arith.constant dense<0.000000e+00> : vector<256x16xf32>
    %23 = tpu.matmul %21, %22, %cst_20 {dimension_numbers = #tpu.dot_dimension_numbers<[1], [0], [0], [1], [0, 0, 1, 1], [], []>} : vector<256x64xf32>, vector<64x16xf32>, vector<256x16xf32> -> vector<256x16xf32>
    %c0_21 = arith.constant 0 : index
    %c0_22 = arith.constant 0 : index
    %24 = vector.load %arg9[%c0_21, %c0_22] : memref<1x16xf32, #tpu.memory_space<vmem>>, vector<1x16xf32>
    %25 = vector.broadcast %24 : vector<1x16xf32> to vector<256x16xf32>
    %26 = arith.addf %23, %25 : vector<256x16xf32>
    %cst_23 = arith.constant 0.000000e+00 : f32
    %27 = vector.broadcast %cst_23 : f32 to vector<256x16xf32>
    %28 = arith.subf %27, %26 : vector<256x16xf32>
    %29 = math.exp %28 : vector<256x16xf32>
    %cst_24 = arith.constant 1.000000e+00 : f32
    %30 = vector.broadcast %cst_24 : f32 to vector<256x16xf32>
    %31 = arith.addf %30, %29 : vector<256x16xf32>
    %32 = tpu.reciprocal %31 {approx = true} : vector<256x16xf32> -> vector<256x16xf32>
    %c0_25 = arith.constant 0 : index
    %c0_26 = arith.constant 0 : index
    %33 = vector.load %arg10[%c0_25, %c0_26] : memref<256x16xf32, #tpu.memory_space<vmem>>, vector<256x16xf32>
    tpu.vector_store %arg10[%c0_25, %c0_26], %32 {strides = array<i32>} : memref<256x16xf32, #tpu.memory_space<vmem>>, vector<256x16xf32>,
    return
  }
  func.func @transform_0(%arg0: i32) -> (i32, i32) {
    %c0_i32 = arith.constant 0 : i32
    %c0_i32_0 = arith.constant 0 : i32
    return %arg0, %c0_i32 : i32, i32
  }
  func.func @transform_1(%arg0: i32) -> (i32, i32) {
    %c0_i32 = arith.constant 0 : i32
    %c0_i32_0 = arith.constant 0 : i32
    %c0_i32_1 = arith.constant 0 : i32
    return %c0_i32, %c0_i32_0 : i32, i32
  }
  func.func @transform_2(%arg0: i32) -> (i32, i32) {
    %c0_i32 = arith.constant 0 : i32
    %c0_i32_0 = arith.constant 0 : i32
    %c0_i32_1 = arith.constant 0 : i32
    return %c0_i32, %c0_i32_0 : i32, i32
  }
  func.func @transform_3(%arg0: i32) -> (i32, i32) {
    %c0_i32 = arith.constant 0 : i32
    %c0_i32_0 = arith.constant 0 : i32
    %c0_i32_1 = arith.constant 0 : i32
    return %c0_i32, %c0_i32_0 : i32, i32
  }
  func.func @transform_4(%arg0: i32) -> (i32, i32) {
    %c0_i32 = arith.constant 0 : i32
    %c0_i32_0 = arith.constant 0 : i32
    %c0_i32_1 = arith.constant 0 : i32
    return %c0_i32, %c0_i32_0 : i32, i32
  }
  func.func @transform_5(%arg0: i32) -> (i32, i32) {
    %c0_i32 = arith.constant 0 : i32
    %c0_i32_0 = arith.constant 0 : i32
    %c0_i32_1 = arith.constant 0 : i32
    return %c0_i32, %c0_i32_0 : i32, i32
  }
  func.func @transform_6(%arg0: i32) -> (i32, i32) {
    %c0_i32 = arith.constant 0 : i32
    %c0_i32_0 = arith.constant 0 : i32
    %c0_i32_1 = arith.constant 0 : i32
    return %c0_i32, %c0_i32_0 : i32, i32
  }
  func.func @transform_7(%arg0: i32) -> (i32, i32) {
    %c0_i32 = arith.constant 0 : i32
    %c0_i32_0 = arith.constant 0 : i32
    %c0_i32_1 = arith.constant 0 : i32
    return %c0_i32, %c0_i32_0 : i32, i32
  }
  func.func @transform_8(%arg0: i32) -> (i32, i32) {
    %c0_i32 = arith.constant 0 : i32
    %c0_i32_0 = arith.constant 0 : i32
    %c0_i32_1 = arith.constant 0 : i32
    return %c0_i32, %c0_i32_0 : i32, i32
  }
  func.func @transform_9(%arg0: i32) -> (i32, i32) {
    %c0_i32 = arith.constant 0 : i32
    %c0_i32_0 = arith.constant 0 : i32
    return %arg0, %c0_i32 : i32, i32
  }
}

</mosaic_0001>

<bundles_post_ra>
// kernel: tpu_custom_call.1
= control target key start
LH: loop header
LB: loop body
LE: loop exit
PB: predicated region body
PF: predicated region fallthrough
CT: control target
= control target key end

     0   :  { %vm73_vm0 = vcmask 130048   ;;  %vm442_vm1 = vcmask 523264   ;;  %vm807_vm2 = vcmask 261120   ;;  %s3007_s1 = inlined_call_operand.vmem [shape: f32[16,64], index: 1, kind: input, shape index: {}]   ;;  %s3008_s0 = inlined_call_operand.vmem [shape: f32[256,16], index: 0, kind: input, shape index: {}]   ;;  %s3009_s3 = inlined_call_operand.vmem [shape: f32[64,32], index: 3, kind: input, shape index: {}]   ;;  %s3010_s5 = inlined_call_operand.vmem [shape: f32[32,64], index: 5, kind: input, shape index: {}]   ;;  %s3011_s2 = inlined_call_operand.vmem [shape: f32[1,64], index: 2, kind: input, shape index: {}]   ;;  %s3012_s7 = inlined_call_operand.vmem [shape: f32[64,16], index: 7, kind: input, shape index: {}]   ;;  %s3013_s4 = inlined_call_operand.vmem [shape: f32[1,32], index: 4, kind: input, shape index: {}]   ;;  %s3014_s6 = inlined_call_operand.vmem [shape: f32[1,64], index: 6, kind: input, shape index: {}]   ;;  %s3015_s8 = inlined_call_operand.vmem [shape: f32[1,16], index: 8, kind: input, shape index: {}]   ;;  %s3016_s9 = inlined_call_operand.vmem [shape: f32[256,16], index: 9, kind: output, shape index: {}]  }
   0x1   :  { %v64_v0 = vld [vmem:[%s3007_s1] sm:$0xff]  ;;  %v65_v1 = vld [vmem:[%s3007_s1 + $0x8] sm:$0xff]  ;;  %v34_v5 = vld [vmem:[%s3008_s0 + $0x10] sm:$0xff] }
   0x2   :  { %v32_v2 = vld [vmem:[%s3008_s0] sm:$0xff]  ;;  %v2211_v3 = vpack.c.bf16 %v65_v1, %v64_v0  ;;  %v33_v4 = vld [vmem:[%s3008_s0 + $0x8] sm:$0xff]  ;;  %v35_v6 = vld [vmem:[%s3008_s0 + $0x18] sm:$0xff] }
   0x3   :  { %1979 = vmatprep.mubr.msk.f32.mxu0 %vm73_vm0, %v32_v2  ;;  %v36_v7 = vld [vmem:[%s3008_s0 + $0x20] sm:$0xff]  ;;  %v428_v9 = vld [vmem:[%s3009_s3 + $0x8] sm:$0xff]  ;;  %v429_v12 = vld [vmem:[%s3009_s3 + $0x10] sm:$0xff] }
   0x4   :  { %2212 = vmatprep.subr.bf16.mxu0 %v2211_v3  ;;  %v427_v8 = vld [vmem:[%s3009_s3] sm:$0xff]  ;;  %v37_v10 = vld [vmem:[%s3008_s0 + $0x28] sm:$0xff]  ;;  %v430_v13 = vld [vmem:[%s3009_s3 + $0x18] sm:$0xff] }
   0x5   :  { %2214 = vmatpush3.bf16.msra.mxu0 %v2211_v3  ;;  %v2215_v11 = vpack.c.bf16 %v428_v9, %v427_v8  ;;  %v38_v14 = vld [vmem:[%s3008_s0 + $0x30] sm:$0xff]  ;;  %v2219_v15 = vpack.c.bf16 %v430_v13, %v429_v12  ;;  %v431_v16 = vld [vmem:[%s3009_s3 + $0x20] sm:$0xff]  ;;  %v432_v17 = vld [vmem:[%s3009_s3 + $0x28] sm:$0xff] }
   0x6   :  { %v39_v18 = vld [vmem:[%s3008_s0 + $0x38] sm:$0xff]  ;;  %v2223_v19 = vpack.c.bf16 %v432_v17, %v431_v16  ;;  %v40_v20 = vld [vmem:[%s3008_s0 + $0x40] sm:$0xff]  ;;  %v41_v21 = vld [vmem:[%s3008_s0 + $0x48] sm:$0xff] }
   0x7   :  { %2216 = vmatprep.subr.bf16.mxu1 %v2215_v11  ;;  %v42_v22 = vld [vmem:[%s3008_s0 + $0x50] sm:$0xff]  ;;  %v43_v23 = vld [vmem:[%s3008_s0 + $0x58] sm:$0xff]  ;;  %v44_v24 = vld [vmem:[%s3008_s0 + $0x60] sm:$0xff] }
   0x8   :  { %1980 = vmatmul.mubr.msk.f32.vlgmr.msra.gmra.mrb[0].mxu0 %vm73_vm0, %v33_v4  ;;  %2218 = vmatpush3.bf16.msra.mxu1 %v2215_v11  ;;  %v45_v25 = vld [vmem:[%s3008_s0 + $0x68] sm:$0xff]  ;;  %v46_v26 = vld [vmem:[%s3008_s0 + $0x70] sm:$0xff]  ;;  %v47_v27 = vld [vmem:[%s3008_s0 + $0x78] sm:$0xff] }
   0x9   :  { %1982 = vmatprep.mubr.msk.f32.mxu0 %vm73_vm0, %v34_v5  ;;  %2220 = vmatprep.subr.bf16.mxu1 %v2219_v15  ;;  %v48_v28 = vld [vmem:[%s3008_s0 + $0x80] sm:$0xff]  ;;  %v49_v29 = vld [vmem:[%s3008_s0 + $0x88] sm:$0xff]  ;;  %v50_v30 = vld [vmem:[%s3008_s0 + $0x90] sm:$0xff] }
   0xa   :  { %v51_v31 = vld [vmem:[%s3008_s0 + $0x98] sm:$0xff]  ;;  %v52_v32 = vld [vmem:[%s3008_s0 + $0xa0] sm:$0xff]  ;;  %v53_v33 = vld [vmem:[%s3008_s0 + $0xa8] sm:$0xff] }
   0xb   :  { %v54_v34 = vld [vmem:[%s3008_s0 + $0xb0] sm:$0xff]  ;;  %v55_v35 = vld [vmem:[%s3008_s0 + $0xb8] sm:$0xff]  ;;  %v56_v36 = vld [vmem:[%s3008_s0 + $0xc0] sm:$0xff] }
   0xc   :  { %1983 = vmatmul.mubr.msk.f32.gmra.mrb[2].mxu0 %vm73_vm0, %v35_v6  ;;  %2222 = vmatpush3.bf16.msra.mxu1 %v2219_v15  ;;  %v57_v37 = vld [vmem:[%s3008_s0 + $0xc8] sm:$0xff]  ;;  %v58_v38 = vld [vmem:[%s3008_s0 + $0xd0] sm:$0xff]  ;;  %v59_v39 = vld [vmem:[%s3008_s0 + $0xd8] sm:$0xff] }
   0xd   :  { %1985 = vmatprep.mubr.msk.f32.mxu0 %vm73_vm0, %v36_v7  ;;  %2224 = vmatprep.subr.bf16.mxu1 %v2223_v19  ;;  %v60_v40 = vld [vmem:[%s3008_s0 + $0xe0] sm:$0xff]  ;;  %v61_v41 = vld [vmem:[%s3008_s0 + $0xe8] sm:$0xff]  ;;  %v62_v42 = vld [vmem:[%s3008_s0 + $0xf0] sm:$0xff] }
   0xe   :  { %v63_v43 = vld [vmem:[%s3008_s0 + $0xf8] sm:$0xff]  ;;  %v433_v44 = vld [vmem:[%s3009_s3 + $0x30] sm:$0xff]  ;;  %v796_v47 = vld [vmem:[%s3010_s5] sm:$0xff] }
   0xf   :  { %v434_v45 = vld [vmem:[%s3009_s3 + $0x38] sm:$0xff]  ;;  %v797_v48 = vld [vmem:[%s3010_s5 + $0x8] sm:$0xff]  ;;  %v798_v49 = vld [vmem:[%s3010_s5 + $0x10] sm:$0xff] }
  0x10   :  { %1986 = vmatmul.mubr.msk.f32.gmra.mrb[4].mxu0 %vm73_vm0, %v37_v10  ;;  %2226 = vmatpush3.bf16.msra.mxu1 %v2223_v19  ;;  %v2227_v46 = vpack.c.bf16 %v434_v45, %v433_v44  ;;  %v2231_v50 = vpack.c.bf16 %v797_v48, %v796_v47  ;;  %v799_v51 = vld [vmem:[%s3010_s5 + $0x18] sm:$0xff]  ;;  %v2614_v53 = vld [vmem:[%s3011_s2] ss:$0 sm:$0xff] }
  0x11   :  { %1988 = vmatprep.mubr.msk.f32.mxu0 %vm73_vm0, %v38_v14  ;;  %v2235_v52 = vpack.c.bf16 %v799_v51, %v798_v49 }
  0x12   :  { %2228 = vmatprep.subr.bf16.mxu1 %v2227_v46  ;;  %2232 = vmatprep.subr.bf16.mxu0 %v2231_v50 }
  0x13   :  { %2234 = vmatpush3.bf16.msra.mxu0 %v2231_v50 }
  0x14   :  { %1989 = vmatmul.mubr.msk.f32.gmra.mrb[6].mxu0 %vm73_vm0, %v39_v18  ;;  %2230 = vmatpush3.bf16.msra.mxu1 %v2227_v46 }
  0x15   :  { %1991 = vmatprep.mubr.msk.f32.mxu0 %vm73_vm0, %v40_v20  ;;  %2236 = vmatprep.subr.bf16.mxu0 %v2235_v52 }
  0x17   :  { %2238 = vmatpush3.bf16.msra.mxu0 %v2235_v52 }
  0x18   :  { %1992 = vmatmul.mubr.msk.f32.gmra.mrb[8].mxu0 %vm73_vm0, %v41_v21 }
  0x19   :  { %1994 = vmatprep.mubr.msk.f32.mxu0 %vm73_vm0, %v42_v22 }
  0x1c   :  { %1995 = vmatmul.mubr.msk.f32.gmra.mrb[10].mxu0 %vm73_vm0, %v43_v23 }
  0x1d   :  { %1997 = vmatprep.mubr.msk.f32.mxu0 %vm73_vm0, %v44_v24 }
  0x20   :  { %1998 = vmatmul.mubr.msk.f32.gmra.mrb[12].mxu0 %vm73_vm0, %v45_v25 }
  0x21   :  { %2000 = vmatprep.mubr.msk.f32.mxu0 %vm73_vm0, %v46_v26 }
  0x24   :  { %2001 = vmatmul.mubr.msk.f32.gmra.mrb[14].mxu0 %vm73_vm0, %v47_v27 }
  0x25   :  { %2003 = vmatprep.mubr.msk.f32.mxu0 %vm73_vm0, %v48_v28 }
  0x28   :  { %2004 = vmatmul.mubr.msk.f32.gmra.mrb[16].mxu0 %vm73_vm0, %v49_v29 }
  0x29   :  { %2006 = vmatprep.mubr.msk.f32.mxu0 %vm73_vm0, %v50_v30 }
  0x2c   :  { %2007 = vmatmul.mubr.msk.f32.gmra.mrb[18].mxu0 %vm73_vm0, %v51_v31 }
  0x2d   :  { %2009 = vmatprep.mubr.msk.f32.mxu0 %vm73_vm0, %v52_v32 }
  0x30   :  { %2010 = vmatmul.mubr.msk.f32.gmra.mrb[20].mxu0 %vm73_vm0, %v53_v33 }
  0x31   :  { %2012 = vmatprep.mubr.msk.f32.mxu0 %vm73_vm0, %v54_v34 }
  0x34   :  { %2013 = vmatmul.mubr.msk.f32.gmra.mrb[22].mxu0 %vm73_vm0, %v55_v35 }
  0x35   :  { %2015 = vmatprep.mubr.msk.f32.mxu0 %vm73_vm0, %v56_v36 }
  0x38   :  { %2016 = vmatmul.mubr.msk.f32.gmra.mrb[24].mxu0 %vm73_vm0, %v57_v37 }
  0x39   :  { %2018 = vmatprep.mubr.msk.f32.mxu0 %vm73_vm0, %v58_v38 }
  0x3c   :  { %2019 = vmatmul.mubr.msk.f32.gmra.mrb[26].mxu0 %vm73_vm0, %v59_v39 }
  0x3d   :  { %2021 = vmatprep.mubr.msk.f32.mxu0 %vm73_vm0, %v60_v40 }
  0x40   :  { %2022 = vmatmul.mubr.msk.f32.gmra.mrb[28].mxu0 %vm73_vm0, %v61_v41 }
  0x41   :  { %2024 = vmatprep.mubr.msk.f32.mxu0 %vm73_vm0, %v62_v42 }
  0x44   :  { %2025 = vmatmul.mubr.msk.f32.gmra.mrb[30].mxu0 %vm73_vm0, %v63_v43 }
  0xdb   :  { %v1981_v54 = vpop.f32.mrb[0].mxu0 }
  0xdc   :  { %v242_v55 = vadd.f32 %v1981_v54, %v2614_v53  ;;  %v236_v56 = vpop.f32.mrb[1].mxu0 }
  0xdd   :  { %v237_v57 = vadd.f32 %v2614_v53, %v236_v56 }
  0xde   :  { %v396_v60 = vmax.f32 %v242_v55, 0.0 }
  0xdf   :  { %v395_v58 = vmax.f32 %v237_v57, 0.0  ;;  %v1984_v59 = vpop.f32.mrb[2].mxu0 }
  0xe0   :  { %v252_v61 = vadd.f32 %v1984_v59, %v2614_v53  ;;  %v246_v62 = vpop.f32.mrb[3].mxu0 }
  0xe1   :  { %v247_v63 = vadd.f32 %v2614_v53, %v246_v62  ;;  %2043 = vmatprep.mubr.msk.f32.mxu1 %vm442_vm1, %v395_v58 }
  0xe2   :  { %2044 = vmatmul.mubr.msk.f32.vlgmr.msra.gmra.mrb[0].mxu1 %vm442_vm1, %v396_v60  ;;  %v398_v2 = vmax.f32 %v252_v61, 0.0 }
  0xe3   :  { %v397_v0 = vmax.f32 %v247_v63, 0.0  ;;  %v1987_v1 = vpop.f32.mrb[4].mxu0 }
  0xe4   :  { %v262_v3 = vadd.f32 %v1987_v1, %v2614_v53  ;;  %v256_v4 = vpop.f32.mrb[5].mxu0 }
  0xe5   :  { %v257_v5 = vadd.f32 %v2614_v53, %v256_v4  ;;  %2046 = vmatprep.mubr.msk.f32.mxu1 %vm442_vm1, %v397_v0 }
  0xe6   :  { %2047 = vmatmul.mubr.msk.f32.gmra.mrb[2].mxu1 %vm442_vm1, %v398_v2  ;;  %v400_v8 = vmax.f32 %v262_v3, 0.0 }
  0xe7   :  { %v399_v6 = vmax.f32 %v257_v5, 0.0  ;;  %v1990_v7 = vpop.f32.mrb[6].mxu0 }
  0xe8   :  { %v272_v9 = vadd.f32 %v1990_v7, %v2614_v53  ;;  %v266_v10 = vpop.f32.mrb[7].mxu0 }
  0xe9   :  { %v267_v11 = vadd.f32 %v2614_v53, %v266_v10  ;;  %2049 = vmatprep.mubr.msk.f32.mxu1 %vm442_vm1, %v399_v6 }
  0xea   :  { %2050 = vmatmul.mubr.msk.f32.gmra.mrb[4].mxu1 %vm442_vm1, %v400_v8  ;;  %v402_v14 = vmax.f32 %v272_v9, 0.0 }
  0xeb   :  { %v401_v12 = vmax.f32 %v267_v11, 0.0  ;;  %v1993_v13 = vpop.f32.mrb[8].mxu0 }
  0xec   :  { %v282_v15 = vadd.f32 %v1993_v13, %v2614_v53  ;;  %v276_v16 = vpop.f32.mrb[9].mxu0 }
  0xed   :  { %v277_v17 = vadd.f32 %v2614_v53, %v276_v16  ;;  %2052 = vmatprep.mubr.msk.f32.mxu1 %vm442_vm1, %v401_v12 }
  0xee   :  { %2053 = vmatmul.mubr.msk.f32.gmra.mrb[6].mxu1 %vm442_vm1, %v402_v14  ;;  %v404_v20 = vmax.f32 %v282_v15, 0.0 }
  0xef   :  { %v403_v18 = vmax.f32 %v277_v17, 0.0  ;;  %v1996_v19 = vpop.f32.mrb[10].mxu0 }
  0xf0   :  { %v292_v21 = vadd.f32 %v1996_v19, %v2614_v53  ;;  %v286_v22 = vpop.f32.mrb[11].mxu0 }
  0xf1   :  { %v287_v23 = vadd.f32 %v2614_v53, %v286_v22  ;;  %2055 = vmatprep.mubr.msk.f32.mxu1 %vm442_vm1, %v403_v18 }
  0xf2   :  { %2056 = vmatmul.mubr.msk.f32.gmra.mrb[8].mxu1 %vm442_vm1, %v404_v20  ;;  %v406_v26 = vmax.f32 %v292_v21, 0.0 }
  0xf3   :  { %v405_v24 = vmax.f32 %v287_v23, 0.0  ;;  %v1999_v25 = vpop.f32.mrb[12].mxu0  ;;  %v1161_v23 = vld [vmem:[%s3012_s7] sm:$0xff] }
  0xf4   :  { %v302_v27 = vadd.f32 %v1999_v25, %v2614_v53  ;;  %v296_v28 = vpop.f32.mrb[13].mxu0 }
  0xf5   :  { %v297_v29 = vadd.f32 %v2614_v53, %v296_v28  ;;  %2058 = vmatprep.mubr.msk.f32.mxu1 %vm442_vm1, %v405_v24  ;;  %v1162_v24 = vld [vmem:[%s3012_s7 + $0x8] sm:$0xff]  ;;  %v1165_v28 = vld [vmem:[%s3012_s7 + $0x20] sm:$0xff] }
  0xf6   :  { %2059 = vmatmul.mubr.msk.f32.gmra.mrb[10].mxu1 %vm442_vm1, %v406_v26  ;;  %v408_v32 = vmax.f32 %v302_v27, 0.0  ;;  %v2239_v25 = vpack.c.bf16 %v1162_v24, %v1161_v23  ;;  %v1164_v26 = vld [vmem:[%s3012_s7 + $0x18] sm:$0xff] }
  0xf7   :  { %v407_v30 = vmax.f32 %v297_v29, 0.0  ;;  %v2002_v31 = vpop.f32.mrb[14].mxu0  ;;  %v1166_v29 = vld [vmem:[%s3012_s7 + $0x28] sm:$0xff] }
  0xf8   :  { %v312_v33 = vadd.f32 %v2002_v31, %v2614_v53  ;;  %v306_v34 = vpop.f32.mrb[15].mxu0  ;;  %2255 = vmatprep.subr.bf16.mxu1 %v2239_v25  ;;  %2240 = vmatprep.subr.bf16.mxu0 %v2239_v25  ;;  %v1167_v31 = vld [vmem:[%s3012_s7 + $0x30] sm:$0xff] }
  0xf9   :  { %v307_v35 = vadd.f32 %v2614_v53, %v306_v34  ;;  %2061 = vmatprep.mubr.msk.f32.mxu1 %vm442_vm1, %v407_v30  ;;  %2259 = vmatpush3.bf16.msra.mxu1 %v2239_v25  ;;  %v2247_v30 = vpack.c.bf16 %v1166_v29, %v1165_v28  ;;  %v2707_v34 = vld [vmem:[%s3013_s4] ss:$0 sm:$0xff] }
  0xfa   :  { %2062 = vmatmul.mubr.msk.f32.gmra.mrb[12].mxu1 %vm442_vm1, %v408_v32  ;;  %v410_v38 = vmax.f32 %v312_v33, 0.0  ;;  %v1168_v32 = vld [vmem:[%s3012_s7 + $0x38] sm:$0xff] }
  0xfb   :  { %v409_v36 = vmax.f32 %v307_v35, 0.0  ;;  %v2005_v37 = vpop.f32.mrb[16].mxu0  ;;  %v2251_v33 = vpack.c.bf16 %v1168_v32, %v1167_v31 }
  0xfc   :  { %v322_v39 = vadd.f32 %v2005_v37, %v2614_v53  ;;  %v316_v40 = vpop.f32.mrb[17].mxu0 }
  0xfd   :  { %v317_v41 = vadd.f32 %v2614_v53, %v316_v40  ;;  %2064 = vmatprep.mubr.msk.f32.mxu1 %vm442_vm1, %v409_v36 }
  0xfe   :  { %2065 = vmatmul.mubr.msk.f32.gmra.mrb[14].mxu1 %vm442_vm1, %v410_v38  ;;  %v412_v44 = vmax.f32 %v322_v39, 0.0 }
  0xff   :  { %v411_v42 = vmax.f32 %v317_v41, 0.0  ;;  %v2008_v43 = vpop.f32.mrb[18].mxu0 }
 0x100   :  { %v332_v45 = vadd.f32 %v2008_v43, %v2614_v53  ;;  %v326_v46 = vpop.f32.mrb[19].mxu0 }
 0x101   :  { %v327_v47 = vadd.f32 %v2614_v53, %v326_v46  ;;  %2067 = vmatprep.mubr.msk.f32.mxu1 %vm442_vm1, %v411_v42 }
 0x102   :  { %2068 = vmatmul.mubr.msk.f32.gmra.mrb[16].mxu1 %vm442_vm1, %v412_v44  ;;  %v414_v50 = vmax.f32 %v332_v45, 0.0 }
 0x103   :  { %v413_v48 = vmax.f32 %v327_v47, 0.0  ;;  %v2011_v49 = vpop.f32.mrb[20].mxu0 }
 0x104   :  { %v342_v51 = vadd.f32 %v2011_v49, %v2614_v53  ;;  %v336_v52 = vpop.f32.mrb[21].mxu0 }
 0x105   :  { %v337_v54 = vadd.f32 %v2614_v53, %v336_v52  ;;  %2070 = vmatprep.mubr.msk.f32.mxu1 %vm442_vm1, %v413_v48 }
 0x106   :  { %2071 = vmatmul.mubr.msk.f32.gmra.mrb[18].mxu1 %vm442_vm1, %v414_v50  ;;  %v416_v57 = vmax.f32 %v342_v51, 0.0 }
 0x107   :  { %v415_v55 = vmax.f32 %v337_v54, 0.0  ;;  %v2014_v56 = vpop.f32.mrb[22].mxu0 }
 0x108   :  { %v352_v58 = vadd.f32 %v2014_v56, %v2614_v53  ;;  %v346_v59 = vpop.f32.mrb[23].mxu0 }
 0x109   :  { %v347_v60 = vadd.f32 %v2614_v53, %v346_v59  ;;  %2073 = vmatprep.mubr.msk.f32.mxu1 %vm442_vm1, %v415_v55 }
 0x10a   :  { %2074 = vmatmul.mubr.msk.f32.gmra.mrb[20].mxu1 %vm442_vm1, %v416_v57  ;;  %v418_v63 = vmax.f32 %v352_v58, 0.0 }
 0x10b   :  { %v417_v61 = vmax.f32 %v347_v60, 0.0  ;;  %v2017_v62 = vpop.f32.mrb[24].mxu0 }
 0x10c   :  { %v362_v0 = vadd.f32 %v2017_v62, %v2614_v53  ;;  %v356_v1 = vpop.f32.mrb[25].mxu0 }
 0x10d   :  { %v357_v2 = vadd.f32 %v2614_v53, %v356_v1  ;;  %2076 = vmatprep.mubr.msk.f32.mxu1 %vm442_vm1, %v417_v61 }
 0x10e   :  { %2077 = vmatmul.mubr.msk.f32.gmra.mrb[22].mxu1 %vm442_vm1, %v418_v63  ;;  %v420_v5 = vmax.f32 %v362_v0, 0.0 }
 0x10f   :  { %v419_v3 = vmax.f32 %v357_v2, 0.0  ;;  %v2020_v4 = vpop.f32.mrb[26].mxu0 }
 0x110   :  { %v372_v6 = vadd.f32 %v2020_v4, %v2614_v53  ;;  %v366_v7 = vpop.f32.mrb[27].mxu0 }
 0x111   :  { %v367_v8 = vadd.f32 %v2614_v53, %v366_v7  ;;  %2079 = vmatprep.mubr.msk.f32.mxu1 %vm442_vm1, %v419_v3 }
 0x112   :  { %2080 = vmatmul.mubr.msk.f32.gmra.mrb[24].mxu1 %vm442_vm1, %v420_v5  ;;  %v422_v11 = vmax.f32 %v372_v6, 0.0 }
 0x113   :  { %v421_v9 = vmax.f32 %v367_v8, 0.0  ;;  %v2023_v10 = vpop.f32.mrb[28].mxu0 }
 0x114   :  { %v382_v12 = vadd.f32 %v2023_v10, %v2614_v53  ;;  %v376_v13 = vpop.f32.mrb[29].mxu0 }
 0x115   :  { %v377_v14 = vadd.f32 %v2614_v53, %v376_v13  ;;  %2082 = vmatprep.mubr.msk.f32.mxu1 %vm442_vm1, %v421_v9 }
 0x116   :  { %2083 = vmatmul.mubr.msk.f32.gmra.mrb[26].mxu1 %vm442_vm1, %v422_v11  ;;  %v424_v17 = vmax.f32 %v382_v12, 0.0 }
 0x117   :  { %v423_v15 = vmax.f32 %v377_v14, 0.0  ;;  %v2026_v16 = vpop.f32.mrb[30].mxu0 }
 0x118   :  { %v392_v18 = vadd.f32 %v2026_v16, %v2614_v53  ;;  %v386_v19 = vpop.f32.mrb[31].mxu0 }
 0x119   :  { %v387_v20 = vadd.f32 %v2614_v53, %v386_v19  ;;  %2085 = vmatprep.mubr.msk.f32.mxu1 %vm442_vm1, %v423_v15  ;;  %v1163_v53 = vld [vmem:[%s3012_s7 + $0x10] sm:$0xff] }
 0x11a   :  { %2086 = vmatmul.mubr.msk.f32.gmra.mrb[28].mxu1 %vm442_vm1, %v424_v17  ;;  %v426_v22 = vmax.f32 %v392_v18, 0.0  ;;  %v2243_v27 = vpack.c.bf16 %v1164_v26, %v1163_v53 }
 0x11b   :  { %v425_v21 = vmax.f32 %v387_v20, 0.0 }
 0x11c   :  { %2256 = vmatprep.subr.bf16.mxu1 %v2243_v27 }
 0x11d   :  { %2088 = vmatprep.mubr.msk.f32.mxu1 %vm442_vm1, %v425_v21  ;;  %2260 = vmatpush3.bf16.msra.mxu1 %v2243_v27 }
 0x11e   :  { %2089 = vmatmul.mubr.msk.f32.gmra.mrb[30].mxu1 %vm442_vm1, %v426_v22  ;;  %2257 = vmatprep.subr.bf16.mxu1 %v2247_v30 }
 0x121   :  { %2261 = vmatpush3.bf16.msra.mxu1 %v2247_v30 }
 0x122   :  { %2258 = vmatprep.subr.bf16.mxu1 %v2251_v33 }
 0x125   :  { %2262 = vmatpush3.bf16.msra.mxu1 %v2251_v33 }
 0x1b5   :  { %v2045_v35 = vpop.f32.mrb[0].mxu1 }
 0x1b6   :  { %v611_v36 = vadd.f32 %v2045_v35, %v2707_v34  ;;  %v605_v37 = vpop.f32.mrb[1].mxu1 }
 0x1b7   :  { %v606_v38 = vadd.f32 %v2707_v34, %v605_v37 }
 0x1b8   :  { %v765_v41 = vmax.f32 %v611_v36, 0.0 }
 0x1b9   :  { %v764_v39 = vmax.f32 %v606_v38, 0.0  ;;  %v2048_v40 = vpop.f32.mrb[2].mxu1 }
 0x1ba   :  { %v621_v42 = vadd.f32 %v2048_v40, %v2707_v34  ;;  %v615_v43 = vpop.f32.mrb[3].mxu1 }
 0x1bb   :  { %v616_v44 = vadd.f32 %v2707_v34, %v615_v43  ;;  %2099 = vmatprep.mubr.msk.f32.mxu0 %vm807_vm2, %v764_v39 }
 0x1bc   :  { %2100 = vmatmul.mubr.msk.f32.vlgmr.msra.gmra.mrb[32].mxu0 %vm807_vm2, %v765_v41  ;;  %v767_v47 = vmax.f32 %v621_v42, 0.0 }
 0x1bd   :  { %v766_v45 = vmax.f32 %v616_v44, 0.0  ;;  %v2051_v46 = vpop.f32.mrb[4].mxu1  ;;  %2242 = vmatpush3.bf16.msra.mxu0 %v2239_v25 }
 0x1be   :  { %v631_v48 = vadd.f32 %v2051_v46, %v2707_v34  ;;  %v625_v49 = vpop.f32.mrb[5].mxu1  ;;  %2244 = vmatprep.subr.bf16.mxu0 %v2243_v27 }
 0x1bf   :  { %v626_v50 = vadd.f32 %v2707_v34, %v625_v49  ;;  %2102 = vmatprep.mubr.msk.f32.mxu0 %vm807_vm2, %v766_v45 }
 0x1c0   :  { %2103 = vmatmul.mubr.msk.f32.gmra.mrb[34].mxu0 %vm807_vm2, %v767_v47  ;;  %v769_v54 = vmax.f32 %v631_v48, 0.0 }
 0x1c1   :  { %v768_v51 = vmax.f32 %v626_v50, 0.0  ;;  %v2054_v52 = vpop.f32.mrb[6].mxu1  ;;  %2246 = vmatpush3.bf16.msra.mxu0 %v2243_v27 }
 0x1c2   :  { %v641_v55 = vadd.f32 %v2054_v52, %v2707_v34  ;;  %v635_v56 = vpop.f32.mrb[7].mxu1  ;;  %2248 = vmatprep.subr.bf16.mxu0 %v2247_v30 }
 0x1c3   :  { %v636_v57 = vadd.f32 %v2707_v34, %v635_v56  ;;  %2105 = vmatprep.mubr.msk.f32.mxu0 %vm807_vm2, %v768_v51 }
 0x1c4   :  { %2106 = vmatmul.mubr.msk.f32.gmra.mrb[36].mxu0 %vm807_vm2, %v769_v54  ;;  %v771_v60 = vmax.f32 %v641_v55, 0.0 }
 0x1c5   :  { %v770_v58 = vmax.f32 %v636_v57, 0.0  ;;  %v2057_v59 = vpop.f32.mrb[8].mxu1  ;;  %2250 = vmatpush3.bf16.msra.mxu0 %v2247_v30 }
 0x1c6   :  { %v651_v61 = vadd.f32 %v2057_v59, %v2707_v34  ;;  %v645_v62 = vpop.f32.mrb[9].mxu1  ;;  %2252 = vmatprep.subr.bf16.mxu0 %v2251_v33 }
 0x1c7   :  { %v646_v63 = vadd.f32 %v2707_v34, %v645_v62  ;;  %2108 = vmatprep.mubr.msk.f32.mxu0 %vm807_vm2, %v770_v58 }
 0x1c8   :  { %2109 = vmatmul.mubr.msk.f32.gmra.mrb[38].mxu0 %vm807_vm2, %v771_v60  ;;  %v773_v2 = vmax.f32 %v651_v61, 0.0 }
 0x1c9   :  { %v772_v0 = vmax.f32 %v646_v63, 0.0  ;;  %v2060_v1 = vpop.f32.mrb[10].mxu1  ;;  %2254 = vmatpush3.bf16.msra.mxu0 %v2251_v33 }
 0x1ca   :  { %v661_v3 = vadd.f32 %v2060_v1, %v2707_v34  ;;  %v655_v4 = vpop.f32.mrb[11].mxu1 }
 0x1cb   :  { %v656_v5 = vadd.f32 %v2707_v34, %v655_v4  ;;  %2111 = vmatprep.mubr.msk.f32.mxu0 %vm807_vm2, %v772_v0 }
 0x1cc   :  { %2112 = vmatmul.mubr.msk.f32.gmra.mrb[40].mxu0 %vm807_vm2, %v773_v2  ;;  %v775_v8 = vmax.f32 %v661_v3, 0.0 }
 0x1cd   :  { %v774_v6 = vmax.f32 %v656_v5, 0.0  ;;  %v2063_v7 = vpop.f32.mrb[12].mxu1  ;;  %v2776_v5 = vld [vmem:[%s3014_s6] ss:$0 sm:$0xff] }
 0x1ce   :  { %v671_v9 = vadd.f32 %v2063_v7, %v2707_v34  ;;  %v665_v10 = vpop.f32.mrb[13].mxu1 }
 0x1cf   :  { %v666_v11 = vadd.f32 %v2707_v34, %v665_v10  ;;  %2114 = vmatprep.mubr.msk.f32.mxu0 %vm807_vm2, %v774_v6 }
 0x1d0   :  { %2115 = vmatmul.mubr.msk.f32.gmra.mrb[42].mxu0 %vm807_vm2, %v775_v8  ;;  %v777_v14 = vmax.f32 %v671_v9, 0.0 }
 0x1d1   :  { %v776_v12 = vmax.f32 %v666_v11, 0.0  ;;  %v2066_v13 = vpop.f32.mrb[14].mxu1 }
 0x1d2   :  { %v681_v15 = vadd.f32 %v2066_v13, %v2707_v34  ;;  %v675_v16 = vpop.f32.mrb[15].mxu1 }
 0x1d3   :  { %v676_v17 = vadd.f32 %v2707_v34, %v675_v16  ;;  %2117 = vmatprep.mubr.msk.f32.mxu0 %vm807_vm2, %v776_v12 }
 0x1d4   :  { %2118 = vmatmul.mubr.msk.f32.gmra.mrb[44].mxu0 %vm807_vm2, %v777_v14  ;;  %v779_v20 = vmax.f32 %v681_v15, 0.0 }
 0x1d5   :  { %v778_v18 = vmax.f32 %v676_v17, 0.0  ;;  %v2069_v19 = vpop.f32.mrb[16].mxu1 }
 0x1d6   :  { %v691_v21 = vadd.f32 %v2069_v19, %v2707_v34  ;;  %v685_v22 = vpop.f32.mrb[17].mxu1 }
 0x1d7   :  { %v686_v23 = vadd.f32 %v2707_v34, %v685_v22  ;;  %2120 = vmatprep.mubr.msk.f32.mxu0 %vm807_vm2, %v778_v18 }
 0x1d8   :  { %2121 = vmatmul.mubr.msk.f32.gmra.mrb[46].mxu0 %vm807_vm2, %v779_v20  ;;  %v781_v25 = vmax.f32 %v691_v21, 0.0 }
 0x1d9   :  { %v780_v24 = vmax.f32 %v686_v23, 0.0  ;;  %v2072_v53 = vpop.f32.mrb[18].mxu1 }
 0x1da   :  { %v701_v26 = vadd.f32 %v2072_v53, %v2707_v34  ;;  %v695_v27 = vpop.f32.mrb[19].mxu1 }
 0x1db   :  { %v696_v28 = vadd.f32 %v2707_v34, %v695_v27  ;;  %2123 = vmatprep.mubr.msk.f32.mxu0 %vm807_vm2, %v780_v24 }
 0x1dc   :  { %2124 = vmatmul.mubr.msk.f32.gmra.mrb[48].mxu0 %vm807_vm2, %v781_v25  ;;  %v783_v31 = vmax.f32 %v701_v26, 0.0 }
 0x1dd   :  { %v782_v29 = vmax.f32 %v696_v28, 0.0  ;;  %v2075_v30 = vpop.f32.mrb[20].mxu1 }
 0x1de   :  { %v711_v32 = vadd.f32 %v2075_v30, %v2707_v34  ;;  %v705_v33 = vpop.f32.mrb[21].mxu1 }
 0x1df   :  { %v706_v35 = vadd.f32 %v2707_v34, %v705_v33  ;;  %2126 = vmatprep.mubr.msk.f32.mxu0 %vm807_vm2, %v782_v29 }
 0x1e0   :  { %2127 = vmatmul.mubr.msk.f32.gmra.mrb[50].mxu0 %vm807_vm2, %v783_v31  ;;  %v785_v38 = vmax.f32 %v711_v32, 0.0 }
 0x1e1   :  { %v784_v36 = vmax.f32 %v706_v35, 0.0  ;;  %v2078_v37 = vpop.f32.mrb[22].mxu1 }
 0x1e2   :  { %v721_v39 = vadd.f32 %v2078_v37, %v2707_v34  ;;  %v715_v40 = vpop.f32.mrb[23].mxu1 }
 0x1e3   :  { %v716_v41 = vadd.f32 %v2707_v34, %v715_v40  ;;  %2129 = vmatprep.mubr.msk.f32.mxu0 %vm807_vm2, %v784_v36 }
 0x1e4   :  { %2130 = vmatmul.mubr.msk.f32.gmra.mrb[52].mxu0 %vm807_vm2, %v785_v38  ;;  %v787_v44 = vmax.f32 %v721_v39, 0.0 }
 0x1e5   :  { %v786_v42 = vmax.f32 %v716_v41, 0.0  ;;  %v2081_v43 = vpop.f32.mrb[24].mxu1 }
 0x1e6   :  { %v731_v45 = vadd.f32 %v2081_v43, %v2707_v34  ;;  %v725_v46 = vpop.f32.mrb[25].mxu1 }
 0x1e7   :  { %v726_v47 = vadd.f32 %v2707_v34, %v725_v46  ;;  %2132 = vmatprep.mubr.msk.f32.mxu0 %vm807_vm2, %v786_v42 }
 0x1e8   :  { %2133 = vmatmul.mubr.msk.f32.gmra.mrb[54].mxu0 %vm807_vm2, %v787_v44  ;;  %v789_v50 = vmax.f32 %v731_v45, 0.0 }
 0x1e9   :  { %v788_v48 = vmax.f32 %v726_v47, 0.0  ;;  %v2084_v49 = vpop.f32.mrb[26].mxu1 }
 0x1ea   :  { %v741_v51 = vadd.f32 %v2084_v49, %v2707_v34  ;;  %v735_v52 = vpop.f32.mrb[27].mxu1 }
 0x1eb   :  { %v736_v54 = vadd.f32 %v2707_v34, %v735_v52  ;;  %2135 = vmatprep.mubr.msk.f32.mxu0 %vm807_vm2, %v788_v48 }
 0x1ec   :  { %2136 = vmatmul.mubr.msk.f32.gmra.mrb[56].mxu0 %vm807_vm2, %v789_v50  ;;  %v791_v57 = vmax.f32 %v741_v51, 0.0 }
 0x1ed   :  { %v790_v55 = vmax.f32 %v736_v54, 0.0  ;;  %v2087_v56 = vpop.f32.mrb[28].mxu1 }
 0x1ee   :  { %v751_v58 = vadd.f32 %v2087_v56, %v2707_v34  ;;  %v745_v59 = vpop.f32.mrb[29].mxu1 }
 0x1ef   :  { %v746_v60 = vadd.f32 %v2707_v34, %v745_v59  ;;  %2138 = vmatprep.mubr.msk.f32.mxu0 %vm807_vm2, %v790_v55 }
 0x1f0   :  { %2139 = vmatmul.mubr.msk.f32.gmra.mrb[58].mxu0 %vm807_vm2, %v791_v57  ;;  %v793_v63 = vmax.f32 %v751_v58, 0.0 }
 0x1f1   :  { %v792_v61 = vmax.f32 %v746_v60, 0.0  ;;  %v2090_v62 = vpop.f32.mrb[30].mxu1 }
 0x1f2   :  { %v761_v0 = vadd.f32 %v2090_v62, %v2707_v34  ;;  %v755_v1 = vpop.f32.mrb[31].mxu1 }
 0x1f3   :  { %v756_v2 = vadd.f32 %v2707_v34, %v755_v1  ;;  %2141 = vmatprep.mubr.msk.f32.mxu0 %vm807_vm2, %v792_v61 }
 0x1f4   :  { %2142 = vmatmul.mubr.msk.f32.gmra.mrb[60].mxu0 %vm807_vm2, %v793_v63  ;;  %v795_v4 = vmax.f32 %v761_v0, 0.0 }
 0x1f5   :  { %v794_v3 = vmax.f32 %v756_v2, 0.0 }
 0x1f7   :  { %2144 = vmatprep.mubr.msk.f32.mxu0 %vm807_vm2, %v794_v3 }
 0x1f8   :  { %2145 = vmatmul.mubr.msk.f32.gmra.mrb[62].mxu0 %vm807_vm2, %v795_v4 }
 0x28f   :  { %v2101_v6 = vpop.f32.mrb[32].mxu0 }
 0x290   :  { %v976_v7 = vadd.f32 %v2101_v6, %v2776_v5  ;;  %v970_v8 = vpop.f32.mrb[33].mxu0 }
 0x291   :  { %v971_v34 = vadd.f32 %v2776_v5, %v970_v8 }
 0x292   :  { %v1130_v11 = vmax.f32 %v976_v7, 0.0 }
 0x293   :  { %v1129_v9 = vmax.f32 %v971_v34, 0.0  ;;  %v2104_v10 = vpop.f32.mrb[34].mxu0 }
 0x294   :  { %v986_v12 = vadd.f32 %v2104_v10, %v2776_v5  ;;  %v980_v13 = vpop.f32.mrb[35].mxu0 }
 0x295   :  { %v981_v14 = vadd.f32 %v2776_v5, %v980_v13  ;;  %2163 = vmatprep.mubr.msk.f32.mxu0 %vm442_vm1, %v1129_v9 }
 0x296   :  { %2164 = vmatmul.mubr.msk.f32.vlgmr.msra.gmra.mrb[64].mxu0 %vm442_vm1, %v1130_v11  ;;  %v1132_v17 = vmax.f32 %v986_v12, 0.0 }
 0x297   :  { %v1131_v15 = vmax.f32 %v981_v14, 0.0  ;;  %v2107_v16 = vpop.f32.mrb[36].mxu0 }
 0x298   :  { %v996_v18 = vadd.f32 %v2107_v16, %v2776_v5  ;;  %v990_v19 = vpop.f32.mrb[37].mxu0 }
 0x299   :  { %v991_v20 = vadd.f32 %v2776_v5, %v990_v19  ;;  %2166 = vmatprep.mubr.msk.f32.mxu1 %vm442_vm1, %v1131_v15 }
 0x29a   :  { %2167 = vmatmul.mubr.msk.f32.vlgmr.msra.gmra.mrb[32].mxu1 %vm442_vm1, %v1132_v17  ;;  %v1134_v23 = vmax.f32 %v996_v18, 0.0 }
 0x29b   :  { %v1133_v21 = vmax.f32 %v991_v20, 0.0  ;;  %v2110_v22 = vpop.f32.mrb[38].mxu0 }
 0x29c   :  { %v1006_v24 = vadd.f32 %v2110_v22, %v2776_v5  ;;  %v1000_v53 = vpop.f32.mrb[39].mxu0 }
 0x29d   :  { %v1001_v25 = vadd.f32 %v2776_v5, %v1000_v53  ;;  %2169 = vmatprep.mubr.msk.f32.mxu1 %vm442_vm1, %v1133_v21 }
 0x29e   :  { %2170 = vmatmul.mubr.msk.f32.gmra.mrb[34].mxu1 %vm442_vm1, %v1134_v23  ;;  %v1136_v28 = vmax.f32 %v1006_v24, 0.0 }
 0x29f   :  { %v1135_v26 = vmax.f32 %v1001_v25, 0.0  ;;  %v2113_v27 = vpop.f32.mrb[40].mxu0 }
 0x2a0   :  { %v1016_v29 = vadd.f32 %v2113_v27, %v2776_v5  ;;  %v1010_v30 = vpop.f32.mrb[41].mxu0 }
 0x2a1   :  { %v1011_v31 = vadd.f32 %v2776_v5, %v1010_v30  ;;  %2172 = vmatprep.mubr.msk.f32.mxu1 %vm442_vm1, %v1135_v26 }
 0x2a2   :  { %2173 = vmatmul.mubr.msk.f32.gmra.mrb[36].mxu1 %vm442_vm1, %v1136_v28  ;;  %v1138_v35 = vmax.f32 %v1016_v29, 0.0 }
 0x2a3   :  { %v1137_v32 = vmax.f32 %v1011_v31, 0.0  ;;  %v2116_v33 = vpop.f32.mrb[42].mxu0 }
 0x2a4   :  { %v1026_v36 = vadd.f32 %v2116_v33, %v2776_v5  ;;  %v1020_v37 = vpop.f32.mrb[43].mxu0 }
 0x2a5   :  { %v1021_v38 = vadd.f32 %v2776_v5, %v1020_v37  ;;  %2175 = vmatprep.mubr.msk.f32.mxu1 %vm442_vm1, %v1137_v32 }
 0x2a6   :  { %2176 = vmatmul.mubr.msk.f32.gmra.mrb[38].mxu1 %vm442_vm1, %v1138_v35  ;;  %v1140_v41 = vmax.f32 %v1026_v36, 0.0 }
 0x2a7   :  { %v1139_v39 = vmax.f32 %v1021_v38, 0.0  ;;  %v2119_v40 = vpop.f32.mrb[44].mxu0  ;;  %v2845_v38 = vld [vmem:[%s3015_s8] ss:$0 sm:$0xff] }
 0x2a8   :  { %v1036_v42 = vadd.f32 %v2119_v40, %v2776_v5  ;;  %v1030_v43 = vpop.f32.mrb[45].mxu0 }
 0x2a9   :  { %v1031_v44 = vadd.f32 %v2776_v5, %v1030_v43  ;;  %2178 = vmatprep.mubr.msk.f32.mxu1 %vm442_vm1, %v1139_v39 }
 0x2aa   :  { %2179 = vmatmul.mubr.msk.f32.gmra.mrb[40].mxu1 %vm442_vm1, %v1140_v41  ;;  %v1142_v47 = vmax.f32 %v1036_v42, 0.0 }
 0x2ab   :  { %v1141_v45 = vmax.f32 %v1031_v44, 0.0  ;;  %v2122_v46 = vpop.f32.mrb[46].mxu0 }
 0x2ac   :  { %v1046_v48 = vadd.f32 %v2122_v46, %v2776_v5  ;;  %v1040_v49 = vpop.f32.mrb[47].mxu0 }
 0x2ad   :  { %v1041_v50 = vadd.f32 %v2776_v5, %v1040_v49  ;;  %2181 = vmatprep.mubr.msk.f32.mxu1 %vm442_vm1, %v1141_v45 }
 0x2ae   :  { %2182 = vmatmul.mubr.msk.f32.gmra.mrb[42].mxu1 %vm442_vm1, %v1142_v47  ;;  %v1144_v54 = vmax.f32 %v1046_v48, 0.0 }
 0x2af   :  { %v1143_v51 = vmax.f32 %v1041_v50, 0.0  ;;  %v2125_v52 = vpop.f32.mrb[48].mxu0 }
 0x2b0   :  { %v1056_v55 = vadd.f32 %v2125_v52, %v2776_v5  ;;  %v1050_v56 = vpop.f32.mrb[49].mxu0 }
 0x2b1   :  { %v1051_v57 = vadd.f32 %v2776_v5, %v1050_v56  ;;  %2184 = vmatprep.mubr.msk.f32.mxu1 %vm442_vm1, %v1143_v51 }
 0x2b2   :  { %2185 = vmatmul.mubr.msk.f32.gmra.mrb[44].mxu1 %vm442_vm1, %v1144_v54  ;;  %v1146_v60 = vmax.f32 %v1056_v55, 0.0 }
 0x2b3   :  { %v1145_v58 = vmax.f32 %v1051_v57, 0.0  ;;  %v2128_v59 = vpop.f32.mrb[50].mxu0 }
 0x2b4   :  { %v1066_v61 = vadd.f32 %v2128_v59, %v2776_v5  ;;  %v1060_v62 = vpop.f32.mrb[51].mxu0 }
 0x2b5   :  { %v1061_v63 = vadd.f32 %v2776_v5, %v1060_v62  ;;  %2187 = vmatprep.mubr.msk.f32.mxu1 %vm442_vm1, %v1145_v58 }
 0x2b6   :  { %2188 = vmatmul.mubr.msk.f32.gmra.mrb[46].mxu1 %vm442_vm1, %v1146_v60  ;;  %v1148_v2 = vmax.f32 %v1066_v61, 0.0 }
 0x2b7   :  { %v1147_v0 = vmax.f32 %v1061_v63, 0.0  ;;  %v2131_v1 = vpop.f32.mrb[52].mxu0 }
 0x2b8   :  { %v1076_v3 = vadd.f32 %v2131_v1, %v2776_v5  ;;  %v1070_v4 = vpop.f32.mrb[53].mxu0 }
 0x2b9   :  { %v1071_v6 = vadd.f32 %v2776_v5, %v1070_v4  ;;  %2190 = vmatprep.mubr.msk.f32.mxu1 %vm442_vm1, %v1147_v0 }
 0x2ba   :  { %2191 = vmatmul.mubr.msk.f32.gmra.mrb[48].mxu1 %vm442_vm1, %v1148_v2  ;;  %v1150_v34 = vmax.f32 %v1076_v3, 0.0 }
 0x2bb   :  { %v1149_v7 = vmax.f32 %v1071_v6, 0.0  ;;  %v2134_v8 = vpop.f32.mrb[54].mxu0 }
 0x2bc   :  { %v1086_v9 = vadd.f32 %v2134_v8, %v2776_v5  ;;  %v1080_v10 = vpop.f32.mrb[55].mxu0 }
 0x2bd   :  { %v1081_v11 = vadd.f32 %v2776_v5, %v1080_v10  ;;  %2193 = vmatprep.mubr.msk.f32.mxu1 %vm442_vm1, %v1149_v7 }
 0x2be   :  { %2194 = vmatmul.mubr.msk.f32.gmra.mrb[50].mxu1 %vm442_vm1, %v1150_v34  ;;  %v1152_v14 = vmax.f32 %v1086_v9, 0.0 }
 0x2bf   :  { %v1151_v12 = vmax.f32 %v1081_v11, 0.0  ;;  %v2137_v13 = vpop.f32.mrb[56].mxu0 }
 0x2c0   :  { %v1096_v15 = vadd.f32 %v2137_v13, %v2776_v5  ;;  %v1090_v16 = vpop.f32.mrb[57].mxu0 }
 0x2c1   :  { %v1091_v17 = vadd.f32 %v2776_v5, %v1090_v16  ;;  %2196 = vmatprep.mubr.msk.f32.mxu1 %vm442_vm1, %v1151_v12 }
 0x2c2   :  { %2197 = vmatmul.mubr.msk.f32.gmra.mrb[52].mxu1 %vm442_vm1, %v1152_v14  ;;  %v1154_v20 = vmax.f32 %v1096_v15, 0.0 }
 0x2c3   :  { %v1153_v18 = vmax.f32 %v1091_v17, 0.0  ;;  %v2140_v19 = vpop.f32.mrb[58].mxu0 }
 0x2c4   :  { %v1106_v21 = vadd.f32 %v2140_v19, %v2776_v5  ;;  %v1100_v22 = vpop.f32.mrb[59].mxu0 }
 0x2c5   :  { %v1101_v23 = vadd.f32 %v2776_v5, %v1100_v22  ;;  %2199 = vmatprep.mubr.msk.f32.mxu1 %vm442_vm1, %v1153_v18 }
 0x2c6   :  { %2200 = vmatmul.mubr.msk.f32.gmra.mrb[54].mxu1 %vm442_vm1, %v1154_v20  ;;  %v1156_v25 = vmax.f32 %v1106_v21, 0.0 }
 0x2c7   :  { %v1155_v24 = vmax.f32 %v1101_v23, 0.0  ;;  %v2143_v53 = vpop.f32.mrb[60].mxu0 }
 0x2c8   :  { %v1116_v26 = vadd.f32 %v2143_v53, %v2776_v5  ;;  %v1110_v27 = vpop.f32.mrb[61].mxu0 }
 0x2c9   :  { %v1111_v28 = vadd.f32 %v2776_v5, %v1110_v27  ;;  %2202 = vmatprep.mubr.msk.f32.mxu1 %vm442_vm1, %v1155_v24 }
 0x2ca   :  { %2203 = vmatmul.mubr.msk.f32.gmra.mrb[56].mxu1 %vm442_vm1, %v1156_v25  ;;  %v1158_v31 = vmax.f32 %v1116_v26, 0.0 }
 0x2cb   :  { %v1157_v29 = vmax.f32 %v1111_v28, 0.0  ;;  %v2146_v30 = vpop.f32.mrb[62].mxu0 }
 0x2cc   :  { %v1126_v32 = vadd.f32 %v2146_v30, %v2776_v5  ;;  %v1120_v33 = vpop.f32.mrb[63].mxu0 }
 0x2cd   :  { %v1121_v35 = vadd.f32 %v2776_v5, %v1120_v33  ;;  %2205 = vmatprep.mubr.msk.f32.mxu1 %vm442_vm1, %v1157_v29 }
 0x2ce   :  { %2206 = vmatmul.mubr.msk.f32.gmra.mrb[58].mxu1 %vm442_vm1, %v1158_v31  ;;  %v1160_v37 = vmax.f32 %v1126_v32, 0.0 }
 0x2cf   :  { %v1159_v36 = vmax.f32 %v1121_v35, 0.0 }
 0x2d1   :  { %2208 = vmatprep.mubr.msk.f32.mxu1 %vm442_vm1, %v1159_v36 }
 0x2d2   :  { %2209 = vmatmul.mubr.msk.f32.gmra.mrb[60].mxu1 %vm442_vm1, %v1160_v37 }
 0x369   :  { %v2165_v39 = vpop.f32.mrb[64].mxu0 }
 0x36a   :  { %v1344_v40 = vadd.f32 %v2165_v39, %v2845_v38  ;;  %v1338_v41 = vpop.f32.mrb[65].mxu0 }
 0x36b   :  { %v1339_v5 = vadd.f32 %v2845_v38, %v1338_v41 }
 0x36c   :  { %v1498_v42 = vsub.f32 0.0, %v1344_v40 }
 0x36d   :  { %v1497_v43 = vsub.f32 0.0, %v1339_v5  ;;  %v2168_v44 = vpop.f32.mrb[32].mxu1 }
 0x36e   :  { %v1531_v45 = vmul.f32 1.442695, %v1498_v42  ;;  %v1354_v46 = vadd.f32 %v2168_v44, %v2845_v38  ;;  %v1348_v47 = vpop.f32.mrb[33].mxu1 }
 0x36f   :  { %v1529_v48 = vmul.f32 1.442695, %v1497_v43  ;;  %v1349_v49 = vadd.f32 %v2845_v38, %v1348_v47 }
 0x370   :  { %2263 = vpow2.f32 %v1531_v45  ;;  %v1500_v50 = vsub.f32 0.0, %v1354_v46 }
 0x371   :  { %2265 = vpow2.f32 %v1529_v48  ;;  %v1499_v51 = vsub.f32 0.0, %v1349_v49  ;;  %v2171_v52 = vpop.f32.mrb[34].mxu1 }
 0x372   :  { %v1535_v54 = vmul.f32 1.442695, %v1500_v50  ;;  %v1364_v55 = vadd.f32 %v2171_v52, %v2845_v38  ;;  %v1358_v56 = vpop.f32.mrb[35].mxu1 }
 0x373   :  { %v1533_v57 = vmul.f32 1.442695, %v1499_v51  ;;  %v1359_v58 = vadd.f32 %v2845_v38, %v1358_v56 }
 0x374   :  { %2267 = vpow2.f32 %v1535_v54  ;;  %v1502_v59 = vsub.f32 0.0, %v1364_v55 }
 0x375   :  { %2269 = vpow2.f32 %v1533_v57  ;;  %v1501_v60 = vsub.f32 0.0, %v1359_v58  ;;  %v2174_v61 = vpop.f32.mrb[36].mxu1 }
 0x376   :  { %v1539_v62 = vmul.f32 1.442695, %v1502_v59  ;;  %v1374_v63 = vadd.f32 %v2174_v61, %v2845_v38  ;;  %v1368_v0 = vpop.f32.mrb[37].mxu1 }
 0x377   :  { %v1537_v1 = vmul.f32 1.442695, %v1501_v60  ;;  %v1369_v2 = vadd.f32 %v2845_v38, %v1368_v0 }
 0x378   :  { %2271 = vpow2.f32 %v1539_v62  ;;  %v1504_v3 = vsub.f32 0.0, %v1374_v63 }
 0x379   :  { %2273 = vpow2.f32 %v1537_v1  ;;  %v1503_v4 = vsub.f32 0.0, %v1369_v2  ;;  %v2177_v6 = vpop.f32.mrb[38].mxu1 }
 0x37a   :  { %v2264_v7 = vpop.eup %2263  ;;  %v1543_v8 = vmul.f32 1.442695, %v1504_v3  ;;  %v1384_v34 = vadd.f32 %v2177_v6, %v2845_v38  ;;  %v1378_v9 = vpop.f32.mrb[39].mxu1 }
 0x37b   :  { %v2266_v10 = vpop.eup %2265  ;;  %v1594_v11 = vadd.f32 1.0, %v2264_v7  ;;  %v1541_v12 = vmul.f32 1.442695, %v1503_v4  ;;  %v1379_v13 = vadd.f32 %v2845_v38, %v1378_v9 }
 0x37c   :  { %v1593_v14 = vadd.f32 1.0, %v2266_v10  ;;  %2275 = vpow2.f32 %v1543_v8  ;;  %v1506_v15 = vsub.f32 0.0, %v1384_v34 }
 0x37d   :  { %2277 = vrcp.f32 %v1594_v11  ;;  %v1505_v16 = vsub.f32 0.0, %v1379_v13  ;;  %v2180_v17 = vpop.f32.mrb[40].mxu1 }
 0x37e   :  { %v2268_v18 = vpop.eup %2267  ;;  %2279 = vrcp.f32 %v1593_v14  ;;  %v1547_v19 = vmul.f32 1.442695, %v1506_v15  ;;  %v1394_v20 = vadd.f32 %v2180_v17, %v2845_v38  ;;  %v1388_v21 = vpop.f32.mrb[41].mxu1 }
 0x37f   :  { %v2270_v22 = vpop.eup %2269  ;;  %v1596_v23 = vadd.f32 1.0, %v2268_v18  ;;  %2281 = vpow2.f32 %v1541_v12  ;;  %v1545_v24 = vmul.f32 1.442695, %v1505_v16  ;;  %v1389_v53 = vadd.f32 %v2845_v38, %v1388_v21 }
 0x380   :  { %v1595_v25 = vadd.f32 1.0, %v2270_v22  ;;  %2283 = vpow2.f32 %v1547_v19  ;;  %v1508_v26 = vsub.f32 0.0, %v1394_v20 }
 0x381   :  { %2285 = vrcp.f32 %v1596_v23  ;;  %v1507_v27 = vsub.f32 0.0, %v1389_v53  ;;  %v2183_v28 = vpop.f32.mrb[42].mxu1 }
 0x382   :  { %v2272_v29 = vpop.eup %2271  ;;  %2287 = vrcp.f32 %v1595_v25  ;;  %v1551_v30 = vmul.f32 1.442695, %v1508_v26  ;;  %v1404_v31 = vadd.f32 %v2183_v28, %v2845_v38  ;;  %v1398_v32 = vpop.f32.mrb[43].mxu1 }
 0x383   :  { %v2274_v33 = vpop.eup %2273  ;;  %v1598_v35 = vadd.f32 1.0, %v2272_v29  ;;  %2289 = vpow2.f32 %v1545_v24  ;;  %v1549_v36 = vmul.f32 1.442695, %v1507_v27  ;;  %v1399_v37 = vadd.f32 %v2845_v38, %v1398_v32 }
 0x384   :  { %v1597_v39 = vadd.f32 1.0, %v2274_v33  ;;  %2291 = vpow2.f32 %v1551_v30  ;;  %v1510_v40 = vsub.f32 0.0, %v1404_v31 }
 0x385   :  { %2293 = vrcp.f32 %v1598_v35  ;;  %v1509_v41 = vsub.f32 0.0, %v1399_v37  ;;  %v2186_v5 = vpop.f32.mrb[44].mxu1 }
 0x386   :  { %v2276_v42 = vpop.eup %2275  ;;  %2295 = vrcp.f32 %v1597_v39  ;;  %v1555_v43 = vmul.f32 1.442695, %v1510_v40  ;;  %v1414_v44 = vadd.f32 %v2186_v5, %v2845_v38  ;;  %v1408_v45 = vpop.f32.mrb[45].mxu1 }
 0x387   :  { %v2278_v46 = vpop.eup %2277  ;;  %v1600_v47 = vadd.f32 1.0, %v2276_v42  ;;  %2297 = vpow2.f32 %v1549_v36  ;;  %v1553_v48 = vmul.f32 1.442695, %v1509_v41  ;;  %v1409_v49 = vadd.f32 %v2845_v38, %v1408_v45 }
 0x388   :  { %v2280_v50 = vpop.eup %2279  ;;  %1658 = vst.msk [vmem:[%s3016_s9 + $0x8] sm:$0xff] %vm73_vm0, %v2278_v46  ;;  %2299 = vpow2.f32 %v1555_v43  ;;  %v1512_v51 = vsub.f32 0.0, %v1414_v44 }
 0x389   :  { %v2282_v52 = vpop.eup %2281  ;;  %1657 = vst.msk [vmem:[%s3016_s9] sm:$0xff] %vm73_vm0, %v2280_v50  ;;  %2301 = vrcp.f32 %v1600_v47  ;;  %v1511_v54 = vsub.f32 0.0, %v1409_v49  ;;  %v2189_v55 = vpop.f32.mrb[46].mxu1 }
 0x38a   :  { %v2284_v56 = vpop.eup %2283  ;;  %v1599_v57 = vadd.f32 1.0, %v2282_v52  ;;  %2303 = vpow2.f32 %v1553_v48  ;;  %v1559_v58 = vmul.f32 1.442695, %v1512_v51  ;;  %v1424_v59 = vadd.f32 %v2189_v55, %v2845_v38  ;;  %v1418_v60 = vpop.f32.mrb[47].mxu1 }
 0x38b   :  { %v2286_v61 = vpop.eup %2285  ;;  %v1602_v62 = vadd.f32 1.0, %v2284_v56  ;;  %v1557_v63 = vmul.f32 1.442695, %v1511_v54  ;;  %v1419_v0 = vadd.f32 %v2845_v38, %v1418_v60 }
 0x38c   :  { %v2288_v1 = vpop.eup %2287  ;;  %1660 = vst.msk [vmem:[%s3016_s9 + $0x18] sm:$0xff] %vm73_vm0, %v2286_v61  ;;  %2305 = vrcp.f32 %v1599_v57  ;;  %v1514_v2 = vsub.f32 0.0, %v1424_v59 }
 0x38d   :  { %v2290_v3 = vpop.eup %2289  ;;  %1659 = vst.msk [vmem:[%s3016_s9 + $0x10] sm:$0xff] %vm73_vm0, %v2288_v1  ;;  %2307 = vrcp.f32 %v1602_v62  ;;  %v1513_v4 = vsub.f32 0.0, %v1419_v0  ;;  %v2192_v6 = vpop.f32.mrb[48].mxu1 }
 0x38e   :  { %v2292_v7 = vpop.eup %2291  ;;  %v1601_v8 = vadd.f32 1.0, %v2290_v3  ;;  %2309 = vpow2.f32 %v1559_v58  ;;  %v1563_v34 = vmul.f32 1.442695, %v1514_v2  ;;  %v1434_v9 = vadd.f32 %v2192_v6, %v2845_v38  ;;  %v1428_v10 = vpop.f32.mrb[49].mxu1 }
 0x38f   :  { %v2294_v11 = vpop.eup %2293  ;;  %v1604_v12 = vadd.f32 1.0, %v2292_v7  ;;  %2311 = vpow2.f32 %v1557_v63  ;;  %v1561_v13 = vmul.f32 1.442695, %v1513_v4  ;;  %v1429_v14 = vadd.f32 %v2845_v38, %v1428_v10 }
 0x390   :  { %v2296_v15 = vpop.eup %2295  ;;  %1662 = vst.msk [vmem:[%s3016_s9 + $0x28] sm:$0xff] %vm73_vm0, %v2294_v11  ;;  %2313 = vrcp.f32 %v1601_v8  ;;  %v1516_v16 = vsub.f32 0.0, %v1434_v9 }
 0x391   :  { %v2298_v17 = vpop.eup %2297  ;;  %1661 = vst.msk [vmem:[%s3016_s9 + $0x20] sm:$0xff] %vm73_vm0, %v2296_v15  ;;  %2315 = vrcp.f32 %v1604_v12  ;;  %v1515_v18 = vsub.f32 0.0, %v1429_v14  ;;  %v2195_v19 = vpop.f32.mrb[50].mxu1 }
 0x392   :  { %v2300_v20 = vpop.eup %2299  ;;  %v1603_v21 = vadd.f32 1.0, %v2298_v17  ;;  %2317 = vpow2.f32 %v1563_v34  ;;  %v1567_v22 = vmul.f32 1.442695, %v1516_v16  ;;  %v1444_v23 = vadd.f32 %v2195_v19, %v2845_v38  ;;  %v1438_v24 = vpop.f32.mrb[51].mxu1 }
 0x393   :  { %v2302_v53 = vpop.eup %2301  ;;  %v1606_v25 = vadd.f32 1.0, %v2300_v20  ;;  %2319 = vpow2.f32 %v1561_v13  ;;  %v1439_v26 = vadd.f32 %v2845_v38, %v1438_v24  ;;  %v1565_v28 = vmul.f32 1.442695, %v1515_v18 }
 0x394   :  { %v2304_v27 = vpop.eup %2303  ;;  %1664 = vst.msk [vmem:[%s3016_s9 + $0x38] sm:$0xff] %vm73_vm0, %v2302_v53  ;;  %2321 = vrcp.f32 %v1603_v21  ;;  %v1518_v29 = vsub.f32 0.0, %v1444_v23 }
 0x395   :  { %2323 = vrcp.f32 %v1606_v25  ;;  %v1605_v30 = vadd.f32 1.0, %v2304_v27  ;;  %v1517_v31 = vsub.f32 0.0, %v1439_v26  ;;  %v2198_v32 = vpop.f32.mrb[52].mxu1 }
 0x396   :  { %v2306_v33 = vpop.eup %2305  ;;  %2325 = vpow2.f32 %v1567_v22  ;;  %v1571_v35 = vmul.f32 1.442695, %v1518_v29  ;;  %v1454_v36 = vadd.f32 %v2198_v32, %v2845_v38  ;;  %v1448_v37 = vpop.f32.mrb[53].mxu1 }
 0x397   :  { %v2308_v39 = vpop.eup %2307  ;;  %1663 = vst.msk [vmem:[%s3016_s9 + $0x30] sm:$0xff] %vm73_vm0, %v2306_v33  ;;  %2327 = vrcp.f32 %v1605_v30  ;;  %v1569_v40 = vmul.f32 1.442695, %v1517_v31  ;;  %v1449_v41 = vadd.f32 %v2845_v38, %v1448_v37 }
 0x398   :  { %v2310_v5 = vpop.eup %2309  ;;  %1666 = vst.msk [vmem:[%s3016_s9 + $0x48] sm:$0xff] %vm73_vm0, %v2308_v39  ;;  %2329 = vpow2.f32 %v1565_v28  ;;  %v1520_v42 = vsub.f32 0.0, %v1454_v36 }
 0x399   :  { %v2312_v43 = vpop.eup %2311  ;;  %v1608_v44 = vadd.f32 1.0, %v2310_v5  ;;  %2331 = vpow2.f32 %v1571_v35  ;;  %v1519_v45 = vsub.f32 0.0, %v1449_v41  ;;  %v2201_v46 = vpop.f32.mrb[54].mxu1 }
 0x39a   :  { %v2314_v47 = vpop.eup %2313  ;;  %v1607_v48 = vadd.f32 1.0, %v2312_v43  ;;  %2333 = vpow2.f32 %v1569_v40  ;;  %v1575_v49 = vmul.f32 1.442695, %v1520_v42  ;;  %v1464_v50 = vadd.f32 %v2201_v46, %v2845_v38  ;;  %v1458_v51 = vpop.f32.mrb[55].mxu1 }
 0x39b   :  { %v2316_v52 = vpop.eup %2315  ;;  %1665 = vst.msk [vmem:[%s3016_s9 + $0x40] sm:$0xff] %vm73_vm0, %v2314_v47  ;;  %2335 = vrcp.f32 %v1608_v44  ;;  %v1573_v54 = vmul.f32 1.442695, %v1519_v45  ;;  %v1459_v55 = vadd.f32 %v2845_v38, %v1458_v51 }
 0x39c   :  { %v2318_v56 = vpop.eup %2317  ;;  %1668 = vst.msk [vmem:[%s3016_s9 + $0x58] sm:$0xff] %vm73_vm0, %v2316_v52  ;;  %2337 = vrcp.f32 %v1607_v48  ;;  %v1522_v57 = vsub.f32 0.0, %v1464_v50 }
 0x39d   :  { %v2320_v58 = vpop.eup %2319  ;;  %v1610_v59 = vadd.f32 1.0, %v2318_v56  ;;  %2339 = vpow2.f32 %v1575_v49  ;;  %v1521_v60 = vsub.f32 0.0, %v1459_v55  ;;  %v2204_v61 = vpop.f32.mrb[56].mxu1 }
 0x39e   :  { %v2322_v62 = vpop.eup %2321  ;;  %v1609_v63 = vadd.f32 1.0, %v2320_v58  ;;  %2341 = vpow2.f32 %v1573_v54  ;;  %v1579_v0 = vmul.f32 1.442695, %v1522_v57  ;;  %v1474_v1 = vadd.f32 %v2204_v61, %v2845_v38  ;;  %v1468_v2 = vpop.f32.mrb[57].mxu1 }
 0x39f   :  { %v2324_v3 = vpop.eup %2323  ;;  %1667 = vst.msk [vmem:[%s3016_s9 + $0x50] sm:$0xff] %vm73_vm0, %v2322_v62  ;;  %2343 = vrcp.f32 %v1610_v59  ;;  %v1577_v4 = vmul.f32 1.442695, %v1521_v60  ;;  %v1469_v6 = vadd.f32 %v2845_v38, %v1468_v2 }
 0x3a0   :  { %v2326_v7 = vpop.eup %2325  ;;  %1670 = vst.msk [vmem:[%s3016_s9 + $0x68] sm:$0xff] %vm73_vm0, %v2324_v3  ;;  %2345 = vrcp.f32 %v1609_v63  ;;  %v1524_v8 = vsub.f32 0.0, %v1474_v1 }
 0x3a1   :  { %v2328_v34 = vpop.eup %2327  ;;  %v1612_v9 = vadd.f32 1.0, %v2326_v7  ;;  %2347 = vpow2.f32 %v1579_v0  ;;  %v1523_v10 = vsub.f32 0.0, %v1469_v6  ;;  %v2207_v11 = vpop.f32.mrb[58].mxu1 }
 0x3a2   :  { %v2330_v12 = vpop.eup %2329  ;;  %1669 = vst.msk [vmem:[%s3016_s9 + $0x60] sm:$0xff] %vm73_vm0, %v2328_v34  ;;  %2349 = vpow2.f32 %v1577_v4  ;;  %v1583_v13 = vmul.f32 1.442695, %v1524_v8  ;;  %v1484_v14 = vadd.f32 %v2207_v11, %v2845_v38  ;;  %v1478_v15 = vpop.f32.mrb[59].mxu1 }
 0x3a3   :  { %v2332_v16 = vpop.eup %2331  ;;  %2351 = vrcp.f32 %v1612_v9  ;;  %v1611_v17 = vadd.f32 1.0, %v2330_v12  ;;  %v1479_v18 = vadd.f32 %v2845_v38, %v1478_v15  ;;  %v1581_v21 = vmul.f32 1.442695, %v1523_v10 }
 0x3a4   :  { %v2334_v19 = vpop.eup %2333  ;;  %v1614_v20 = vadd.f32 1.0, %v2332_v16  ;;  %2353 = vpow2.f32 %v1583_v13  ;;  %v1526_v22 = vsub.f32 0.0, %v1484_v14 }
 0x3a5   :  { %v2336_v23 = vpop.eup %2335  ;;  %2355 = vrcp.f32 %v1611_v17  ;;  %v1613_v24 = vadd.f32 1.0, %v2334_v19  ;;  %v1525_v53 = vsub.f32 0.0, %v1479_v18  ;;  %v2210_v25 = vpop.f32.mrb[60].mxu1 }
 0x3a6   :  { %v2338_v26 = vpop.eup %2337  ;;  %1672 = vst.msk [vmem:[%s3016_s9 + $0x78] sm:$0xff] %vm73_vm0, %v2336_v23  ;;  %2357 = vrcp.f32 %v1614_v20  ;;  %v1587_v27 = vmul.f32 1.442695, %v1526_v22  ;;  %v1494_v28 = vadd.f32 %v2210_v25, %v2845_v38  ;;  %v1488_v29 = vpop.f32.mrb[61].mxu1 }
 0x3a7   :  { %v2340_v30 = vpop.eup %2339  ;;  %1671 = vst.msk [vmem:[%s3016_s9 + $0x70] sm:$0xff] %vm73_vm0, %v2338_v26  ;;  %2359 = vrcp.f32 %v1613_v24  ;;  %v1489_v31 = vadd.f32 %v2845_v38, %v1488_v29  ;;  %v1585_v35 = vmul.f32 1.442695, %v1525_v53 }
 0x3a8   :  { %v2342_v32 = vpop.eup %2341  ;;  %v1616_v33 = vadd.f32 1.0, %v2340_v30  ;;  %2361 = vpow2.f32 %v1581_v21  ;;  %v1528_v36 = vsub.f32 0.0, %v1494_v28 }
 0x3a9   :  { %v2344_v37 = vpop.eup %2343  ;;  %v1615_v39 = vadd.f32 1.0, %v2342_v32  ;;  %2363 = vpow2.f32 %v1587_v27  ;;  %v1527_v40 = vsub.f32 0.0, %v1489_v31 }
 0x3aa   :  { %v2346_v41 = vpop.eup %2345  ;;  %1674 = vst.msk [vmem:[%s3016_s9 + $0x88] sm:$0xff] %vm73_vm0, %v2344_v37  ;;  %2365 = vrcp.f32 %v1616_v33  ;;  %v1591_v5 = vmul.f32 1.442695, %v1528_v36 }
 0x3ab   :  { %v2348_v42 = vpop.eup %2347  ;;  %1673 = vst.msk [vmem:[%s3016_s9 + $0x80] sm:$0xff] %vm73_vm0, %v2346_v41  ;;  %2367 = vrcp.f32 %v1615_v39  ;;  %v1589_v44 = vmul.f32 1.442695, %v1527_v40 }
 0x3ac   :  { %v2350_v38 = vpop.eup %2349  ;;  %v1618_v43 = vadd.f32 1.0, %v2348_v42  ;;  %2369 = vpow2.f32 %v1585_v35 }
 0x3ad   :  { %v2352_v45 = vpop.eup %2351  ;;  %v1617_v46 = vadd.f32 1.0, %v2350_v38  ;;  %2371 = vpow2.f32 %v1591_v5 }
 0x3ae   :  { %v2354_v47 = vpop.eup %2353  ;;  %1676 = vst.msk [vmem:[%s3016_s9 + $0x98] sm:$0xff] %vm73_vm0, %v2352_v45  ;;  %2373 = vrcp.f32 %v1618_v43 }
 0x3af   :  { %v2356_v48 = vpop.eup %2355  ;;  %2375 = vrcp.f32 %v1617_v46  ;;  %v1620_v49 = vadd.f32 1.0, %v2354_v47 }
 0x3b0   :  { %v2358_v50 = vpop.eup %2357  ;;  %1675 = vst.msk [vmem:[%s3016_s9 + $0x90] sm:$0xff] %vm73_vm0, %v2356_v48  ;;  %2377 = vpow2.f32 %v1589_v44 }
 0x3b1   :  { %v2360_v51 = vpop.eup %2359  ;;  %1678 = vst.msk [vmem:[%s3016_s9 + $0xa8] sm:$0xff] %vm73_vm0, %v2358_v50  ;;  %2379 = vrcp.f32 %v1620_v49 }
 0x3b2   :  { %v2362_v52 = vpop.eup %2361  ;;  %1677 = vst.msk [vmem:[%s3016_s9 + $0xa0] sm:$0xff] %vm73_vm0, %v2360_v51 }
 0x3b3   :  { %v2364_v54 = vpop.eup %2363  ;;  %v1619_v55 = vadd.f32 1.0, %v2362_v52 }
 0x3b4   :  { %v2366_v56 = vpop.eup %2365  ;;  %v1622_v57 = vadd.f32 1.0, %v2364_v54 }
 0x3b5   :  { %v2368_v58 = vpop.eup %2367  ;;  %1680 = vst.msk [vmem:[%s3016_s9 + $0xb8] sm:$0xff] %vm73_vm0, %v2366_v56  ;;  %2381 = vrcp.f32 %v1619_v55 }
 0x3b6   :  { %v2370_v59 = vpop.eup %2369  ;;  %1679 = vst.msk [vmem:[%s3016_s9 + $0xb0] sm:$0xff] %vm73_vm0, %v2368_v58  ;;  %2383 = vrcp.f32 %v1622_v57 }
 0x3b7   :  { %v2372_v60 = vpop.eup %2371  ;;  %v1621_v61 = vadd.f32 1.0, %v2370_v59 }
 0x3b8   :  { %v2374_v62 = vpop.eup %2373  ;;  %v1624_v63 = vadd.f32 1.0, %v2372_v60 }
 0x3b9   :  { %v2376_v0 = vpop.eup %2375  ;;  %1682 = vst.msk [vmem:[%s3016_s9 + $0xc8] sm:$0xff] %vm73_vm0, %v2374_v62  ;;  %2385 = vrcp.f32 %v1621_v61 }
 0x3ba   :  { %v2378_v1 = vpop.eup %2377  ;;  %1681 = vst.msk [vmem:[%s3016_s9 + $0xc0] sm:$0xff] %vm73_vm0, %v2376_v0  ;;  %2387 = vrcp.f32 %v1624_v63 }
 0x3bb   :  { %v2380_v2 = vpop.eup %2379  ;;  %v1623_v3 = vadd.f32 1.0, %v2378_v1 }
 0x3bc   :  { %1684 = vst.msk [vmem:[%s3016_s9 + $0xd8] sm:$0xff] %vm73_vm0, %v2380_v2 }
 0x3bd   :  { %2389 = vrcp.f32 %v1623_v3 }
 0x3bf   :  { %v2382_v4 = vpop.eup %2381 }
 0x3c0   :  { %v2384_v6 = vpop.eup %2383  ;;  %1683 = vst.msk [vmem:[%s3016_s9 + $0xd0] sm:$0xff] %vm73_vm0, %v2382_v4 }
 0x3c1   :  { %1686 = vst.msk [vmem:[%s3016_s9 + $0xe8] sm:$0xff] %vm73_vm0, %v2384_v6 }
 0x3c3   :  { %v2386_v7 = vpop.eup %2385 }
 0x3c4   :  { %v2388_v8 = vpop.eup %2387  ;;  %1685 = vst.msk [vmem:[%s3016_s9 + $0xe0] sm:$0xff] %vm73_vm0, %v2386_v7 }
 0x3c5   :  { %1688 = vst.msk [vmem:[%s3016_s9 + $0xf8] sm:$0xff] %vm73_vm0, %v2388_v8 }
 0x3c7   :  { %v2390_v34 = vpop.eup %2389 }
 0x3c8   :  { %1687 = vst.msk [vmem:[%s3016_s9 + $0xf0] sm:$0xff] %vm73_vm0, %v2390_v34 }

</bundles_post_ra>
